<compile_context>
chip_gen: v5e
topology: v5e:2x2
jax: 0.10.0
libtpu: 0.0.40
codegen_flags: <defaults>
</compile_context>

<pallas_src>
import functools
import math

import jax
import jax.numpy as jnp
from jax.experimental import pallas as pl
from jax.experimental.pallas import tpu as pltpu


_DEFAULT_BUDGET = 4 * 1024 * 1024  # bytes per (double-buffered) input block


# --------------------------------------------------------------------------
# Kernels
# --------------------------------------------------------------------------
def _gap_kernel_single(x_ref, o_ref, *, inv_p):
    # x_ref: (TB, P, D), o_ref: (TB, D).  Whole reduction axis in one tile.
    s = jnp.sum(x_ref[...].astype(jnp.float32), axis=1)
    o_ref[...] = (s * inv_p).astype(o_ref.dtype)


def _gap_kernel_multi(x_ref, o_ref, acc_ref, *, inv_p, p_total, tile_p):
    # x_ref: (TB, TP, D), o_ref: (TB, D), acc_ref: (TB, D) float32 (resident).
    j = pl.program_id(1)

    @pl.when(j == 0)
    def _init():
        acc_ref[...] = jnp.zeros_like(acc_ref)

    x = x_ref[...].astype(jnp.float32)
    if p_total % tile_p != 0:
        # Ragged tail block along the reduction axis: zero the OOB rows.
        valid = p_total - j * tile_p
        row_ids = jax.lax.broadcasted_iota(jnp.int32, x.shape, dimension=1)
        x = jnp.where(row_ids < valid, x, 0.0)
    acc_ref[...] += jnp.sum(x, axis=1)

    @pl.when(j == pl.num_programs(1) - 1)
    def _finalize():
        o_ref[...] = (acc_ref[...] * inv_p).astype(o_ref.dtype)


def _gap_kernel_lastdim(x_ref, o_ref, *, inv_p):
    # x_ref: (TB, P) with the reduced axis in lanes, o_ref: (TB, 1).
    s = jnp.sum(x_ref[...].astype(jnp.float32), axis=1, keepdims=True)
    o_ref[...] = (s * inv_p).astype(o_ref.dtype)


# --------------------------------------------------------------------------
# Tile selection (byte budget, per-generation safe default)
# --------------------------------------------------------------------------
def _choose_tiles(B, P, D, itemsize, budget):
    """Return (TB, TP): batch rows and reduction rows per grid step."""
    row_bytes = max(1, D * itemsize)            # one (1, 1, D) stripe
    full_rows = budget // max(1, P * row_bytes)  # batch rows if full P per step

    if full_rows >= B:
        # Everything fits a single tile; still keep >=2 batch blocks when
        # possible so v7x megacore can shard the parallel axis.
        if B > 8:
            tb = max(8, ((B // 2) // 8) * 8)
        else:
            tb = B
        return tb, P
    if full_rows >= 8:
        return (full_rows // 8) * 8, P
    # Must tile the reduction axis too.
    tb = B if B <= 8 else 8
    tp = budget // (tb * row_bytes)
    tp = max(8, (tp // 8) * 8)
    tp = min(tp, P)
    return tb, tp


# --------------------------------------------------------------------------
# pallas_call wrappers
# --------------------------------------------------------------------------
def _gap_bpd(x3d, budget):
    """Mean over axis 1 of (B, P, D) -> (B, D)."""
    B, P, D = x3d.shape
    itemsize = jnp.dtype(x3d.dtype).itemsize
    tb, tp = _choose_tiles(B, P, D, itemsize, budget)
    nb = pl.cdiv(B, tb)

    cost = pl.CostEstimate(
        flops=B * P * D,
        transcendentals=0,
        bytes_accessed=(B * P * D + B * D) * itemsize,
    )

    if tp == P:
        # Single-step reduction: no accumulator, no cold-path branches.
        params = pltpu.CompilerParams(
            dimension_semantics=("parallel",),
            vmem_limit_bytes=32 * 1024 * 1024,
        )
        kernel = functools.partial(_gap_kernel_single, inv_p=1.0 / P)
        return pl.pallas_call(
            kernel,
            out_shape=jax.ShapeDtypeStruct((B, D), x3d.dtype),
            grid=(nb,),
            in_specs=[pl.BlockSpec((tb, P, D), lambda i: (i, 0, 0))],
            out_specs=pl.BlockSpec((tb, D), lambda i: (i, 0)),
            compiler_params=params,
            cost_estimate=cost,
        )(x3d)

    # Multi-step reduction: reduction axis last, resident f32 accumulator.
    n_p = pl.cdiv(P, tp)
    params = pltpu.CompilerParams(
        dimension_semantics=("parallel", "arbitrary"),
        vmem_limit_bytes=32 * 1024 * 1024,
    )
    kernel = functools.partial(
        _gap_kernel_multi, inv_p=1.0 / P, p_total=P, tile_p=tp
    )
    return pl.pallas_call(
        kernel,
        out_shape=jax.ShapeDtypeStruct((B, D), x3d.dtype),
        grid=(nb, n_p),
        in_specs=[pl.BlockSpec((tb, tp, D), lambda i, j: (i, j, 0))],
        out_specs=pl.BlockSpec((tb, D), lambda i, j: (i, 0)),
        scratch_shapes=[pltpu.VMEM((tb, D), jnp.float32)],
        compiler_params=params,
        cost_estimate=cost,
    )(x3d)


def _gap_lastdim(x2d, budget):
    """Mean over the last (lane) axis of (M, P) -> (M, 1)."""
    M, P = x2d.shape
    itemsize = jnp.dtype(x2d.dtype).itemsize
    row_bytes = max(1, P * itemsize)
    tb = budget // row_bytes
    if tb >= M:
        tb = M
    elif tb >= 8:
        tb = (tb // 8) * 8
    else:
        tb = M if M <= 8 else 8
    nb = pl.cdiv(M, tb)

    kernel = functools.partial(_gap_kernel_lastdim, inv_p=1.0 / P)
    return pl.pallas_call(
        kernel,
        out_shape=jax.ShapeDtypeStruct((M, 1), x2d.dtype),
        grid=(nb,),
        in_specs=[pl.BlockSpec((tb, P), lambda i: (i, 0))],
        out_specs=pl.BlockSpec((tb, 1), lambda i: (i, 0)),
        compiler_params=pltpu.CompilerParams(
            dimension_semantics=("parallel",),
            vmem_limit_bytes=32 * 1024 * 1024,
        ),
        cost_estimate=pl.CostEstimate(
            flops=M * P, transcendentals=0,
            bytes_accessed=(M * P + M) * itemsize),
    )(x2d)


def global_average_pooling(x, dim=1, budget_bytes=_DEFAULT_BUDGET):
    """Equivalent of GlobalAveragePooling(dim).forward(x) == x.mean(dim=dim)."""
    dim = dim % x.ndim
    lead, trail = x.shape[:dim], x.shape[dim + 1:]
    P = x.shape[dim]
    B = math.prod(lead) if lead else 1
    D = math.prod(trail) if trail else 1

    if D == 1:
        # Reduced axis is (effectively) the trailing axis: keep it in lanes
        # and do a lane/XLU reduction instead of a D=1 sublane layout.
        out = _gap_lastdim(x.reshape(B, P), budget_bytes)
        return out.reshape(lead + trail)

    out = _gap_bpd(x.reshape(B, P, D), budget_bytes)
    return out.reshape(lead + trail)


# --------------------------------------------------------------------------
# Self-test
# --------------------------------------------------------------------------
if __name__ == "__main__":
    key = jax.random.PRNGKey(0)
    k1, k2, k3, k4 = jax.random.split(key, 4)

    # 1) MLP-Mixer default: mean over the patch axis (single-step fast path).
    x1 = jax.random.normal(k1, (2, 8, 32), dtype=jnp.float32)
    o1 = jax.block_until_ready(global_average_pooling(x1, dim=1))
    assert o1.shape == (2, 32), o1.shape
    assert jnp.allclose(o1, jnp.mean(x1, axis=1), atol=1e-5, rtol=1e-5)

    # 2) Multi-step reduction path (forced with a tiny byte budget):
    #    resident f32 accumulator + pl.when init/finalize.
    x2 = jax.random.normal(k2, (2, 64, 128), dtype=jnp.float32)
    o2 = jax.block_until_ready(
        global_average_pooling(x2, dim=1, budget_bytes=16 * 1024)
    )
    assert o2.shape == (2, 128), o2.shape
    assert jnp.allclose(o2, jnp.mean(x2, axis=1), atol=1e-5, rtol=1e-5)

    # 3) Non-divisible reduction length -> ragged tail block gets masked.
    x3 = jax.random.normal(k3, (4, 50, 128), dtype=jnp.float32)
    o3 = jax.block_until_ready(
        global_average_pooling(x3, dim=1, budget_bytes=16 * 1024)
    )
    assert o3.shape == (4, 128), o3.shape
    assert jnp.allclose(o3, jnp.mean(x3, axis=1), atol=1e-5, rtol=1e-5)

    # 4) Reduction over the last axis -> lane-reduction special case.
    x4 = jax.random.normal(k4, (2, 8, 32), dtype=jnp.float32)
    o4 = jax.block_until_ready(global_average_pooling(x4, dim=-1))
    assert o4.shape == (2, 8), o4.shape
    assert jnp.allclose(o4, jnp.mean(x4, axis=-1), atol=1e-5, rtol=1e-5)

    print("KERNEL_OK")
</pallas_src>

<mosaic_0001>
module attributes {stable_mosaic.version = 11 : i64} {
  func.func @_gap_kernel_single(%arg0: i32, %arg1: memref<2x8x32xf32, #tpu.memory_space<vmem>>, %arg2: memref<2x32xf32, #tpu.memory_space<vmem>>) attributes {dimension_semantics = [#tpu.dimension_semantics<parallel>], iteration_bounds = array<i64: 1>, scalar_prefetch = 0 : i64, scratch_operands = 0 : i64, tpu.core_type = #tpu.core_type<tc>, window_params = [{transform_indices = @transform_0, window_bounds = array<i64: 2, 8, 32>}, {transform_indices = @transform_1, window_bounds = array<i64: 2, 32>}]} {
    %c0 = arith.constant 0 : index
    %c0_0 = arith.constant 0 : index
    %c0_1 = arith.constant 0 : index
    %0 = vector.load %arg1[%c0, %c0_0, %c0_1] : memref<2x8x32xf32, #tpu.memory_space<vmem>>, vector<2x8x32xf32>
    %cst = arith.constant dense<0.000000e+00> : vector<2x32xf32>
    %1 = vector.multi_reduction <add>, %0, %cst [1] : vector<2x8x32xf32> to vector<2x32xf32>
    %cst_2 = arith.constant 1.250000e-01 : f32
    %2 = vector.broadcast %cst_2 : f32 to vector<2x32xf32>
    %3 = arith.mulf %1, %2 : vector<2x32xf32>
    %c0_3 = arith.constant 0 : index
    %c0_4 = arith.constant 0 : index
    %4 = vector.load %arg2[%c0_3, %c0_4] : memref<2x32xf32, #tpu.memory_space<vmem>>, vector<2x32xf32>
    tpu.vector_store %arg2[%c0_3, %c0_4], %3 {strides = array<i32>} : memref<2x32xf32, #tpu.memory_space<vmem>>, vector<2x32xf32>,
    return
  }
  func.func @transform_0(%arg0: i32) -> (i32, i32, i32) {
    %c0_i32 = arith.constant 0 : i32
    %c0_i32_0 = arith.constant 0 : i32
    %c0_i32_1 = arith.constant 0 : i32
    return %arg0, %c0_i32, %c0_i32_0 : i32, i32, i32
  }
  func.func @transform_1(%arg0: i32) -> (i32, i32) {
    %c0_i32 = arith.constant 0 : i32
    %c0_i32_0 = arith.constant 0 : i32
    return %arg0, %c0_i32 : i32, i32
  }
}

</mosaic_0001>

<bundles_post_ra>
// kernel: tpu_custom_call.1
= control target key start
LH: loop header
LB: loop body
LE: loop exit
PB: predicated region body
PF: predicated region fallthrough
CT: control target
= control target key end

     0   :  { %6 = vsyncpa [#allocation3], 0  ;;  %s144_s0 = inlined_call_operand.hbm [shape: f32[2,8,32], index: 0, kind: input, shape index: {}]   ;;  %s145_s1 = inlined_call_operand.hbm [shape: f32[2,32], index: 1, kind: output, shape index: {}]  }
   0x1   :  { %7 = vsyncpa [#allocation4], 0  ;;  %s12_s8 = sshll.u32 %s144_s0, 4  ;;  %s124_s9 = smov [#allocation2]   ;;  %s13_s8 = int_to_ptr.hbm [resolvable:$true] %s12_s8 }
   0x2   :  { %s14_s10 = sshll.u32 %s124_s9, 4  ;;  %s125_s11 = smov 128   ;;  %s15_s10 = int_to_ptr.vmem [resolvable:$true] %s14_s10 }
   0x3   :  { %s126_s12 = smov 8  }
   0x4   :  { %20 = dma.hbm_to_vmem [thread:$0]  %s13_s8, 256, %s15_s10, [#allocation3], %s125_s11, %s125_s11, %s126_s12  }
   0x5   :  { %120 = dma.done.wait [#allocation3], 256  }
   0x6   :  { %121 = vsyncadd [#allocation3], 4294967040  ;;  %vm27_vm0 = vcmask 261120   ;;  %v25_v0 = vld [vmem:[#allocation2] sm:$0xff]  ;;  %v26_v1 = vld [vmem:[#allocation2 + $0x8] sm:$0xff]  ;;  %s127_s0 = smov [#allocation5]  }
   0x7   :  { %v28_v2 = vsel %vm27_vm0, %v25_v0, 0.0  ;;  %v35_v3 = vsel %vm27_vm0, %v26_v1, 0.0  ;;  %s56_s13 = sshll.u32 %s127_s0, 4  ;;  %s58_s16 = sshll.u32 %s145_s1, 4  ;;  %vm46_vm1 = vcmask 1041409   ;;  %vm49_vm2 = vcmask 254976   ;;  %s57_s13 = int_to_ptr.vmem [resolvable:$true] %s56_s13  ;;  %s59_s16 = int_to_ptr.hbm [resolvable:$true] %s58_s16 }
   0x8   :  { %v29_v4 = vrot.slane %v28_v2, 4  ;;  %v36_v5 = vrot.slane %v35_v3, 4 }
   0xa   :  { %v30_v6 = vadd.f32 %v29_v4, %v28_v2  ;;  %v37_v7 = vadd.f32 %v36_v5, %v35_v3 }
   0xc   :  { %v31_v8 = vrot.slane %v30_v6, 2  ;;  %v38_v9 = vrot.slane %v37_v7, 2 }
   0xe   :  { %v32_v10 = vadd.f32 %v31_v8, %v30_v6  ;;  %v39_v11 = vadd.f32 %v38_v9, %v37_v7 }
  0x10   :  { %v33_v12 = vrot.slane %v32_v10, 1  ;;  %v40_v13 = vrot.slane %v39_v11, 1 }
  0x12   :  { %v34_v14 = vadd.f32 %v33_v12, %v32_v10  ;;  %v41_v15 = vadd.f32 %v40_v13, %v39_v11 }
  0x14   :  { %v42_v16 = vmul.f32 0.125, %v34_v14  ;;  %v43_v17 = vmul.f32 0.125, %v41_v15 }
  0x16   :  { %v47_v18 = vsel %vm46_vm1, %v43_v17, %v42_v16 }
  0x17   :  { %50 = vst.msk [vmem:[#allocation5] sm:$0x3] %vm49_vm2, %v47_v18 }
  0x18   :  { %61 = dma.vmem_to_hbm [thread:$0]  %s57_s13, 32, %s59_s16, [#allocation4]  }
  0x19   :  { %122 = dma.done.wait [#allocation4], 32  }
  0x1a   :  { %123 = vsyncadd [#allocation4], 4294967264 }
  0x1b   :  { %66 = vsyncpa [#allocation3], 1 }
  0x1c   :  { %67 = vsyncpa [#allocation4], 1 }

</bundles_post_ra>
